<compile_context>
chip_gen: v7x
topology: tpu7x:2x2x1
jax: 0.10.0
libtpu: 0.0.40
codegen_flags: <defaults>
</compile_context>

<pallas_src>
import functools

import jax
import jax.numpy as jnp
from jax.experimental import pallas as pl
from jax.experimental.pallas import tpu as pltpu

BN_EPS = 1e-5
LANE = 128
SUBLANE = 8
DEFAULT_TILE_M = 512               # rows per grid step (sweepable)
VMEM_LIMIT_BYTES = 64 * 1024 * 1024


def _round_up(x, m):
    return (x + m - 1) // m * m


def _pad2d(a, rows, cols):
    return jnp.pad(a, ((0, rows - a.shape[0]), (0, cols - a.shape[1])))


# --------------------------------- kernels ---------------------------------


def _row_mask(tile_m, n_valid):
    rows = (pl.program_id(0) * tile_m
            + jax.lax.broadcasted_iota(jnp.int32, (tile_m, 1), 0))
    return (rows < n_valid).astype(jnp.float32)


def _write_partial_stats(stats_ref, z, mask):
    zm = z * mask                                     # zero out padded rows
    s = jnp.sum(zm, axis=0, keepdims=True)            # (1, D)
    ss = jnp.sum(zm * z, axis=0, keepdims=True)       # (1, D)
    stats_ref[...] = jnp.concatenate([s, ss], axis=0)[None, :, :]


def _linear_stats_kernel(x_ref, w_ref, b_ref, z_ref, stats_ref, *,
                         tile_m, n_valid):
    """z = x @ W + b  plus masked per-tile (sum, sumsq) over rows."""
    z = jnp.dot(x_ref[...].astype(jnp.bfloat16), w_ref[...],
                preferred_element_type=jnp.float32) + b_ref[...]
    z_ref[...] = z
    _write_partial_stats(stats_ref, z, _row_mask(tile_m, n_valid))


def _bn_relu_linear_stats_kernel(z_ref, scale_ref, shift_ref, w_ref, b_ref,
                                 z2_ref, stats_ref, *, tile_m, n_valid):
    """a = relu(z*scale + shift); z2 = a @ W + b; plus masked per-tile stats."""
    a = jnp.maximum(z_ref[...] * scale_ref[...] + shift_ref[...], 0.0)
    z2 = jnp.dot(a.astype(jnp.bfloat16), w_ref[...],
                 preferred_element_type=jnp.float32) + b_ref[...]
    z2_ref[...] = z2
    _write_partial_stats(stats_ref, z2, _row_mask(tile_m, n_valid))


def _bn_relu_kernel(z_ref, scale_ref, shift_ref, o_ref):
    o_ref[...] = jnp.maximum(z_ref[...] * scale_ref[...] + shift_ref[...],
                             0.0).astype(o_ref.dtype)


# ---------------------------- pallas_call wrappers --------------------------


def _tile_spec(tile_m, d):
    return pl.BlockSpec((tile_m, d), lambda i: (i, 0))


def _pinned_spec(shape):
    return pl.BlockSpec(shape, lambda i: tuple(0 for _ in shape))


def _compiler_params():
    return pltpu.CompilerParams(dimension_semantics=("parallel",),
                                vmem_limit_bytes=VMEM_LIMIT_BYTES)


def _linear_with_stats(x, w, b, tile_m, n_valid):
    n_pad, d_in = x.shape
    d_out = w.shape[1]
    num_tiles = n_pad // tile_m
    kern = functools.partial(_linear_stats_kernel, tile_m=tile_m,
                             n_valid=n_valid)
    cost = pl.CostEstimate(
        flops=2 * n_pad * d_in * d_out,
        transcendentals=0,
        bytes_accessed=int(x.size * x.dtype.itemsize
                           + w.size * w.dtype.itemsize + n_pad * d_out * 4))
    return pl.pallas_call(
        kern,
        out_shape=(jax.ShapeDtypeStruct((n_pad, d_out), jnp.float32),
                   jax.ShapeDtypeStruct((num_tiles, 2, d_out), jnp.float32)),
        grid=(num_tiles,),
        in_specs=[_tile_spec(tile_m, d_in),
                  _pinned_spec(w.shape),
                  _pinned_spec(b.shape)],
        out_specs=(_tile_spec(tile_m, d_out),
                   pl.BlockSpec((1, 2, d_out), lambda i: (i, 0, 0))),
        compiler_params=_compiler_params(),
        cost_estimate=cost,
    )(x, w, b)


def _bn_relu_linear_with_stats(z, scale, shift, w, b, tile_m, n_valid):
    n_pad, d_in = z.shape
    d_out = w.shape[1]
    num_tiles = n_pad // tile_m
    kern = functools.partial(_bn_relu_linear_stats_kernel, tile_m=tile_m,
                             n_valid=n_valid)
    cost = pl.CostEstimate(
        flops=2 * n_pad * d_in * d_out + 3 * n_pad * d_in,
        transcendentals=0,
        bytes_accessed=int(z.size * 4 + w.size * w.dtype.itemsize
                           + n_pad * d_out * 4))
    return pl.pallas_call(
        kern,
        out_shape=(jax.ShapeDtypeStruct((n_pad, d_out), jnp.float32),
                   jax.ShapeDtypeStruct((num_tiles, 2, d_out), jnp.float32)),
        grid=(num_tiles,),
        in_specs=[_tile_spec(tile_m, d_in),
                  _pinned_spec(scale.shape),
                  _pinned_spec(shift.shape),
                  _pinned_spec(w.shape),
                  _pinned_spec(b.shape)],
        out_specs=(_tile_spec(tile_m, d_out),
                   pl.BlockSpec((1, 2, d_out), lambda i: (i, 0, 0))),
        compiler_params=_compiler_params(),
        cost_estimate=cost,
    )(z, scale, shift, w, b)


def _bn_relu(z, scale, shift, tile_m, out_dtype):
    n_pad, d = z.shape
    num_tiles = n_pad // tile_m
    return pl.pallas_call(
        _bn_relu_kernel,
        out_shape=jax.ShapeDtypeStruct((n_pad, d), out_dtype),
        grid=(num_tiles,),
        in_specs=[_tile_spec(tile_m, d),
                  _pinned_spec(scale.shape),
                  _pinned_spec(shift.shape)],
        out_specs=_tile_spec(tile_m, d),
        compiler_params=_compiler_params(),
    )(z, scale, shift)


def _bn_scale_shift(stats, n_valid, gamma, beta):
    """Combine per-tile (sum, sumsq) into a folded BN (scale, shift) in f32."""
    s = jnp.sum(stats[:, 0, :], axis=0)                  # (D,)
    ss = jnp.sum(stats[:, 1, :], axis=0)                 # (D,)
    mu = s / n_valid
    var = jnp.maximum(ss / n_valid - mu * mu, 0.0)       # biased variance
    scale = gamma * jax.lax.rsqrt(var + BN_EPS)          # (1, D)
    shift = beta - mu * scale                            # (1, D)
    return scale, shift


# --------------------------------- top level --------------------------------


def apply_node_func(h, params, tile_m=DEFAULT_TILE_M):
    """h: [N, input_dim] float32.  params: dict of weights (see init_params)."""
    n, d_in = h.shape
    hid = params["w1"].shape[1]
    d_out = params["w2"].shape[1]

    d_in_p = _round_up(d_in, LANE)
    hid_p = _round_up(hid, LANE)
    d_out_p = _round_up(d_out, LANE)
    tile_m = min(tile_m, _round_up(n, SUBLANE))
    n_p = _round_up(n, tile_m)

    hp = _pad2d(h.astype(jnp.float32), n_p, d_in_p)
    w1 = _pad2d(params["w1"], d_in_p, hid_p).astype(jnp.bfloat16)
    b1 = _pad2d(params["b1"], 1, hid_p)
    g1 = _pad2d(params["g1"], 1, hid_p)
    be1 = _pad2d(params["be1"], 1, hid_p)
    w2 = _pad2d(params["w2"], hid_p, d_out_p).astype(jnp.bfloat16)
    b2 = _pad2d(params["b2"], 1, d_out_p)
    g2 = _pad2d(params["g2"], 1, d_out_p)
    be2 = _pad2d(params["be2"], 1, d_out_p)

    # MLP layer 1: Linear, with per-tile partial stats for its hidden BN.
    z1, st1 = _linear_with_stats(hp, w1, b1, tile_m, n)
    sc1, sh1 = _bn_scale_shift(st1, n, g1, be1)
    # BN1 + ReLU fused with MLP layer 2 Linear, again emitting stats.
    z2, st2 = _bn_relu_linear_with_stats(z1, sc1, sh1, w2, b2, tile_m, n)
    sc2, sh2 = _bn_scale_shift(st2, n, g2, be2)
    # ApplyNodeFunc's BatchNorm1d(output_dim) + ReLU.
    out = _bn_relu(z2, sc2, sh2, tile_m, h.dtype)
    return out[:n, :d_out]


def init_params(key, input_dim, hidden_dim, output_dim):
    """Deterministic synthetic parameters.

    Linear weights are stored transposed ([in, out]) relative to PyTorch's
    [out, in] so the kernel computes h @ W directly.  BatchNorm gamma/beta
    follow PyTorch default init (ones / zeros).
    """
    k1, k2, k3, k4 = jax.random.split(key, 4)
    scale1 = 1.0 / jnp.sqrt(input_dim)
    scale2 = 1.0 / jnp.sqrt(hidden_dim)
    return {
        "w1": jax.random.uniform(k1, (input_dim, hidden_dim), jnp.float32,
                                 -scale1, scale1),
        "b1": jax.random.uniform(k2, (1, hidden_dim), jnp.float32,
                                 -scale1, scale1),
        "g1": jnp.ones((1, hidden_dim), jnp.float32),
        "be1": jnp.zeros((1, hidden_dim), jnp.float32),
        "w2": jax.random.uniform(k3, (hidden_dim, output_dim), jnp.float32,
                                 -scale2, scale2),
        "b2": jax.random.uniform(k4, (1, output_dim), jnp.float32,
                                 -scale2, scale2),
        "g2": jnp.ones((1, output_dim), jnp.float32),
        "be2": jnp.zeros((1, output_dim), jnp.float32),
    }


def _bn_relu_ref(z, g, be):
    mu = z.mean(0, keepdims=True)
    var = z.var(0, keepdims=True)
    return jnp.maximum((z - mu) * jax.lax.rsqrt(var + BN_EPS) * g + be, 0.0)


def reference_bf16_matmul(h, p):
    """Matches kernel numerics: bf16 MXU matmuls, f32 accumulation & BN math."""
    def lin(x, w, b):
        return jnp.dot(x.astype(jnp.bfloat16), w.astype(jnp.bfloat16),
                       preferred_element_type=jnp.float32) + b
    a1 = _bn_relu_ref(lin(h, p["w1"], p["b1"]), p["g1"], p["be1"])
    return _bn_relu_ref(lin(a1, p["w2"], p["b2"]), p["g2"], p["be2"])


def reference_f32(h, p):
    """Pure-f32 reference for the same forward pass (sanity check)."""
    a1 = _bn_relu_ref(h @ p["w1"] + p["b1"], p["g1"], p["be1"])
    return _bn_relu_ref(a1 @ p["w2"] + p["b2"], p["g2"], p["be2"])


if __name__ == "__main__":
    # N=12 is deliberately not a multiple of 8 so the padded-row masking of the
    # BatchNorm statistics is exercised.
    N, INPUT_DIM, HIDDEN_DIM, OUTPUT_DIM = 12, 16, 32, 32

    key = jax.random.PRNGKey(0)
    k_h, k_p = jax.random.split(key)
    h = jax.random.normal(k_h, (N, INPUT_DIM), jnp.float32)
    params = init_params(k_p, INPUT_DIM, HIDDEN_DIM, OUTPUT_DIM)

    out = apply_node_func(h, params)
    out = jax.block_until_ready(out)
    assert out.shape == (N, OUTPUT_DIM)

    # Tight check against a reference with matching (bf16-matmul) numerics.
    ref_matched = reference_bf16_matmul(h, params)
    assert jnp.allclose(out, ref_matched, atol=2e-3, rtol=2e-3), float(
        jnp.max(jnp.abs(out - ref_matched)))

    # Loose sanity check against the pure-f32 PyTorch-equivalent math
    # (bf16 matmuls introduce small, bounded differences).
    ref_f32 = reference_f32(h, params)
    assert jnp.allclose(out, ref_f32, atol=1e-1, rtol=1e-1), float(
        jnp.max(jnp.abs(out - ref_f32)))

    print("KERNEL_OK")
</pallas_src>

<mosaic_0001>
module attributes {stable_mosaic.version = 11 : i64} {
  func.func @_linear_stats_kernel(%arg0: i32, %arg1: memref<16x128xf32, #tpu.memory_space<vmem>>, %arg2: memref<128x128xbf16, #tpu.memory_space<vmem>>, %arg3: memref<1x128xf32, #tpu.memory_space<vmem>>, %arg4: memref<16x128xf32, #tpu.memory_space<vmem>>, %arg5: memref<1x2x128xf32, #tpu.memory_space<vmem>>) attributes {dimension_semantics = [#tpu.dimension_semantics<parallel>], iteration_bounds = array<i64: 1>, scalar_prefetch = 0 : i64, scratch_operands = 0 : i64, tpu.core_type = #tpu.core_type<tc>, window_params = [{transform_indices = @transform_0, window_bounds = array<i64: 16, 128>}, {pipeline_mode = #tpu.pipeline_mode<synchronous>, transform_indices = @transform_1, window_bounds = array<i64: 128, 128>}, {pipeline_mode = #tpu.pipeline_mode<synchronous>, transform_indices = @transform_2, window_bounds = array<i64: 1, 128>}, {transform_indices = @transform_3, window_bounds = array<i64: 16, 128>}, {transform_indices = @transform_4, window_bounds = array<i64: 1, 2, 128>}]} {
    %c0 = arith.constant 0 : index
    %c0_0 = arith.constant 0 : index
    %0 = vector.load %arg1[%c0, %c0_0] : memref<16x128xf32, #tpu.memory_space<vmem>>, vector<16x128xf32>
    %1 = arith.truncf %0 : vector<16x128xf32> to vector<16x128xbf16>
    %c0_1 = arith.constant 0 : index
    %c0_2 = arith.constant 0 : index
    %2 = vector.load %arg2[%c0_1, %c0_2] : memref<128x128xbf16, #tpu.memory_space<vmem>>, vector<128x128xbf16>
    %cst = arith.constant dense<0.000000e+00> : vector<16x128xf32>
    %3 = tpu.matmul %1, %2, %cst {dimension_numbers = #tpu.dot_dimension_numbers<[1], [0], [0], [1], [0, 0, 1, 1], [], []>} : vector<16x128xbf16>, vector<128x128xbf16>, vector<16x128xf32> -> vector<16x128xf32>
    %c0_3 = arith.constant 0 : index
    %c0_4 = arith.constant 0 : index
    %4 = vector.load %arg3[%c0_3, %c0_4] : memref<1x128xf32, #tpu.memory_space<vmem>>, vector<1x128xf32>
    %5 = vector.broadcast %4 : vector<1x128xf32> to vector<16x128xf32>
    %6 = arith.addf %3, %5 : vector<16x128xf32>
    %c0_5 = arith.constant 0 : index
    %c0_6 = arith.constant 0 : index
    %7 = vector.load %arg4[%c0_5, %c0_6] : memref<16x128xf32, #tpu.memory_space<vmem>>, vector<16x128xf32>
    tpu.vector_store %arg4[%c0_5, %c0_6], %6 {strides = array<i32>} : memref<16x128xf32, #tpu.memory_space<vmem>>, vector<16x128xf32>,
    %c16_i32 = arith.constant 16 : i32
    %8 = arith.muli %arg0, %c16_i32 : i32
    %9 = tpu.iota {dimensions = array<i32: 0>} : vector<16x1xi32>
    %10 = vector.broadcast %8 : i32 to vector<16x1xi32>
    %11 = arith.addi %10, %9 : vector<16x1xi32>
    %c12_i32 = arith.constant 12 : i32
    %12 = vector.broadcast %c12_i32 : i32 to vector<16x1xi32>
    %13 = arith.cmpi slt, %11, %12 : vector<16x1xi32>
    %14 = arith.extui %13 : vector<16x1xi1> to vector<16x1xi32>
    %15 = arith.sitofp %14 : vector<16x1xi32> to vector<16x1xf32>
    %16 = vector.broadcast %15 : vector<16x1xf32> to vector<16x128xf32>
    %17 = arith.mulf %6, %16 : vector<16x128xf32>
    %cst_7 = arith.constant dense<0.000000e+00> : vector<128xf32>
    %18 = vector.multi_reduction <add>, %17, %cst_7 [0] : vector<16x128xf32> to vector<128xf32>
    %19 = vector.shape_cast %18 : vector<128xf32> to vector<1x128xf32>
    %20 = arith.mulf %17, %6 : vector<16x128xf32>
    %cst_8 = arith.constant dense<0.000000e+00> : vector<128xf32>
    %21 = vector.multi_reduction <add>, %20, %cst_8 [0] : vector<16x128xf32> to vector<128xf32>
    %22 = vector.shape_cast %21 : vector<128xf32> to vector<1x128xf32>
    %23 = tpu.concatenate %19, %22 in 0 : vector<1x128xf32>, vector<1x128xf32> -> vector<2x128xf32>
    %24 = vector.shape_cast %23 : vector<2x128xf32> to vector<1x2x128xf32>
    %c0_9 = arith.constant 0 : index
    %c0_10 = arith.constant 0 : index
    %c0_11 = arith.constant 0 : index
    %25 = vector.load %arg5[%c0_9, %c0_10, %c0_11] : memref<1x2x128xf32, #tpu.memory_space<vmem>>, vector<1x2x128xf32>
    tpu.vector_store %arg5[%c0_9, %c0_10, %c0_11], %24 {strides = array<i32>} : memref<1x2x128xf32, #tpu.memory_space<vmem>>, vector<1x2x128xf32>,
    return
  }
  func.func @transform_0(%arg0: i32) -> (i32, i32) {
    %c0_i32 = arith.constant 0 : i32
    %c0_i32_0 = arith.constant 0 : i32
    return %arg0, %c0_i32 : i32, i32
  }
  func.func @transform_1(%arg0: i32) -> (i32, i32) {
    %c0_i32 = arith.constant 0 : i32
    %c0_i32_0 = arith.constant 0 : i32
    %c0_i32_1 = arith.constant 0 : i32
    return %c0_i32, %c0_i32_0 : i32, i32
  }
  func.func @transform_2(%arg0: i32) -> (i32, i32) {
    %c0_i32 = arith.constant 0 : i32
    %c0_i32_0 = arith.constant 0 : i32
    %c0_i32_1 = arith.constant 0 : i32
    return %c0_i32, %c0_i32_0 : i32, i32
  }
  func.func @transform_3(%arg0: i32) -> (i32, i32) {
    %c0_i32 = arith.constant 0 : i32
    %c0_i32_0 = arith.constant 0 : i32
    return %arg0, %c0_i32 : i32, i32
  }
  func.func @transform_4(%arg0: i32) -> (i32, i32, i32) {
    %c0_i32 = arith.constant 0 : i32
    %c0_i32_0 = arith.constant 0 : i32
    %c0_i32_1 = arith.constant 0 : i32
    return %arg0, %c0_i32, %c0_i32_0 : i32, i32, i32
  }
}

</mosaic_0001>

<bundles_post_ra>
// kernel: tpu_custom_call.1
= control target key start
LH: loop header
LB: loop body
LE: loop exit
PB: predicated region body
PF: predicated region fallthrough
CT: control target
= control target key end

     0   :  { %10 = vsyncpa [#allocation3], 0  ;;  %s519_s0 = inlined_call_operand.hbm [shape: f32[16,128], index: 0, kind: input, shape index: {}]   ;;  %s520_s1 = inlined_call_operand.hbm [shape: bf16[128,128], index: 1, kind: input, shape index: {}]   ;;  %s521_s2 = inlined_call_operand.hbm [shape: f32[1,128], index: 2, kind: input, shape index: {}]   ;;  %s522_s3 = inlined_call_operand.hbm [shape: f32[16,128], index: 3, kind: output, shape index: {0}]   ;;  %s523_s4 = inlined_call_operand.hbm [shape: f32[1,2,128], index: 4, kind: output, shape index: {1}]  }
   0x1   :  { %11 = vsyncpa [#allocation6], 0 }
   0x2   :  { %12 = vsyncpa [#allocation4], 0 }
   0x3   :  { %13 = vsyncpa [#allocation10], 0  ;;  %s417_s15 = smov [#allocation5]   ;;  %s299_s19 = scalar_lea.hbm %s520_s1, 1024 }
   0x4   :  { %s31_s16 = sshll.u32 %s417_s15, 4  ;;  %p300_p0 = scmp.ne.s32.totalorder %s520_s1, %s299_s19  ;;  %s32_s16 = int_to_ptr.vmem [resolvable:$true] %s31_s16 }
   0x5   :  { %p303_p1 = scmp.lt.u32.totalorder %s299_s19, %s520_s1 }
   0x7   :  { %p305_p2 = pnand %p303_p1, %p300_p0 }
   0x9   :  { %308 = shalt.err (!%p305_p2)
}
   0xa   :  { %s309_s24 = scalar_lea.vmem %s32_s16, 1024  ;;  %p314_p4 = scmp.lt.s32.totalorder %s32_s16, %s32_s16 }
   0xb   :  { %p310_p3 = scmp.ne.s32.totalorder %s32_s16, %s309_s24  ;;  %p315_p5 = scmp.lt.s32.totalorder %s309_s24, %s309_s24 }
   0xd   :  { %p316_p6 = por %p315_p5, %p314_p4 }
   0xf   :  { %p317_p7 = pnand %p316_p6, %p310_p3 }
  0x11   :  { %320 = shalt.err (!%p317_p7)
}
  0x12   :  { %s418_s25 = smov 64   ;;  %s419_s26 = smov 4  }
  0x13   :  { %37 = dma.hbm_to_vmem [thread:$0]  %s520_s1, 1024, %s32_s16, [#allocation6], %s418_s25, %s418_s25, %s419_s26  }
  0x14   :  { %s420_s29 = smov [#allocation2]   ;;  %s321_s7 = scalar_lea.hbm %s519_s0, 256 }
  0x15   :  { %s19_s30 = sshll.u32 %s420_s29, 4  ;;  %p322_p8 = scmp.ne.s32.totalorder %s519_s0, %s321_s7  ;;  %s20_s30 = int_to_ptr.vmem [resolvable:$true] %s19_s30 }
  0x16   :  { %p325_p9 = scmp.lt.u32.totalorder %s321_s7, %s519_s0 }
  0x18   :  { %p327_p10 = pnand %p325_p9, %p322_p8 }
  0x1a   :  { %330 = shalt.err (!%p327_p10)
}
  0x1b   :  { %s331_s12 = scalar_lea.vmem %s20_s30, 256  ;;  %p336_p12 = scmp.lt.s32.totalorder %s20_s30, %s20_s30 }
  0x1c   :  { %p332_p11 = scmp.ne.s32.totalorder %s20_s30, %s331_s12  ;;  %p337_p13 = scmp.lt.s32.totalorder %s331_s12, %s331_s12 }
  0x1e   :  { %p338_p0 = por %p337_p13, %p336_p12 }
  0x20   :  { %p339_p1 = pnand %p338_p0, %p332_p11 }
  0x22   :  { %342 = shalt.err (!%p339_p1)
}
  0x23   :  { %s421_s1 = smov 128   ;;  %s422_s13 = smov 8  }
  0x24   :  { %25 = dma.hbm_to_vmem [thread:$0]  %s519_s0, 256, %s20_s30, [#allocation3], %s421_s1, %s421_s1, %s422_s13  }
  0x25   :  { %s423_s16 = smov [#allocation7]   ;;  %s343_s20 = scalar_lea.hbm %s521_s2, 16 }
  0x26   :  { %s44_s17 = sshll.u32 %s423_s16, 4  ;;  %p344_p2 = scmp.ne.s32.totalorder %s521_s2, %s343_s20  ;;  %s45_s17 = int_to_ptr.vmem [resolvable:$true] %s44_s17 }
  0x27   :  { %p347_p3 = scmp.lt.u32.totalorder %s343_s20, %s521_s2 }
  0x29   :  { %p349_p4 = pnand %p347_p3, %p344_p2 }
  0x2b   :  { %352 = shalt.err (!%p349_p4)
}
  0x2c   :  { %s353_s25 = scalar_lea.vmem %s45_s17, 16  ;;  %s357_s0 = scalar_lea.vmem %s45_s17, 32 }
  0x2d   :  { %p354_p5 = scmp.ne.s32.totalorder %s45_s17, %s353_s25  ;;  %p358_p6 = scmp.lt.s32.totalorder %s45_s17, %s45_s17 }
  0x2e   :  { %p359_p7 = scmp.lt.s32.totalorder %s357_s0, %s353_s25 }
  0x30   :  { %p360_p8 = por %p359_p7, %p358_p6 }
  0x32   :  { %p361_p9 = pnand %p360_p8, %p354_p5 }
  0x34   :  { %364 = shalt.err (!%p361_p9)
}
  0x35   :  { %47 = dma.hbm_to_vmem [thread:$0]  %s521_s2, 16, %s45_s17, [#allocation6]  }
  0x36   :  { %409 = dma.done.wait [#allocation3], 256  }
  0x37   :  { %410 = vsyncadd [#allocation3], 4294967040 }
  0x38   :  { %411 = dma.done.wait [#allocation6], 1040  }
  0x39   :  { %412 = vsyncadd [#allocation6], 4294966256  ;;  %v424_v0 = vmov 0.0   ;;  %vm425_vm0 = vmmov 0   ;;  %v291_v1 = vld [vmem:[#allocation5] sm:$0xff]   ;;  %v292_v2 = vld [vmem:[#allocation5 + $0x8] sm:$0xff]   ;;  %v176_v12 = vlaneseq }
  0x3a   :  { %260 = vmatprep.subr.bf16.mxu0 %v424_v0  ;;  %276 = vmatprep.mubr.msk.bf16.mxu0 %vm425_vm0, %v424_v0  ;;  %v293_v3 = vld [vmem:[#allocation5 + $0x10] sm:$0xff]   ;;  %v294_v4 = vld [vmem:[#allocation5 + $0x18] sm:$0xff]   ;;  %v295_v5 = vld [vmem:[#allocation5 + $0x20] sm:$0xff]   ;;  %s426_s2 = smov [#allocation8]  }
  0x3b   :  { %261 = vmatpush3.bf16.msra.mxu0 %v291_v1  ;;  %v296_v6 = vld [vmem:[#allocation5 + $0x28] sm:$0xff]   ;;  %v297_v7 = vld [vmem:[#allocation5 + $0x30] sm:$0xff]   ;;  %v298_v8 = vld [vmem:[#allocation5 + $0x38] sm:$0xff]   ;;  %v177_v13 = vshrl.u32 %v176_v12, 7  ;;  %s214_s28 = sshll.u32 %s426_s2, 4  ;;  %s215_s28 = int_to_ptr.vmem [resolvable:$true] %s214_s28 }
  0x3c   :  { %262 = vmatprep.subr.bf16.mxu0 %v424_v0  ;;  %v58_v9 = vld [vmem:[#allocation2] sm:$0xff]  ;;  %v59_v10 = vld [vmem:[#allocation2 + $0x8] sm:$0xff]  ;;  %v241_v15 = vld [vmem:[#allocation7] ss:$0 sm:$0xff]  ;;  %s365_s29 = scalar_lea.vmem %s215_s28, 256  ;;  %p370_p11 = scmp.lt.s32.totalorder %s215_s28, %s215_s28 }
  0x3d   :  { %v60_v11 = vpack.c.bf16 %v59_v10, %v58_v9  ;;  %v178_v14 = vadd.s32 8, %v177_v13  ;;  %p366_p10 = scmp.ne.s32.totalorder %s215_s28, %s365_s29  ;;  %p371_p12 = scmp.lt.s32.totalorder %s365_s29, %s365_s29 }
  0x3f   :  { %263 = vmatpush3.bf16.msra.mxu0 %v292_v2  ;;  %vm183_vm1 = vcmp.lt.s32.totalorder %v178_v14, 12  ;;  %p372_p13 = por %p371_p12, %p370_p11 }
  0x40   :  { %264 = vmatprep.subr.bf16.mxu0 %v424_v0  ;;  %v250_v20 = vsel %vm183_vm1, 1.0, %v424_v0 }
  0x41   :  { %p373_p0 = pnand %p372_p13, %p366_p10 }
  0x43   :  { %265 = vmatpush3.bf16.msra.mxu0 %v293_v3 }
  0x44   :  { %266 = vmatprep.subr.bf16.mxu0 %v424_v0 }
  0x47   :  { %267 = vmatpush3.bf16.msra.mxu0 %v294_v4 }
  0x48   :  { %268 = vmatprep.subr.bf16.mxu0 %v424_v0 }
  0x4b   :  { %269 = vmatpush3.bf16.msra.mxu0 %v295_v5 }
  0x4c   :  { %270 = vmatprep.subr.bf16.mxu0 %v424_v0 }
  0x4f   :  { %271 = vmatpush3.bf16.msra.mxu0 %v296_v6 }
  0x50   :  { %272 = vmatprep.subr.bf16.mxu0 %v424_v0 }
  0x53   :  { %273 = vmatpush3.bf16.msra.mxu0 %v297_v7 }
  0x54   :  { %274 = vmatprep.subr.bf16.mxu0 %v424_v0 }
  0x57   :  { %275 = vmatpush3.bf16.msra.mxu0 %v298_v8 }
  0x5a   :  { %277 = vmatmul.mubr.bf16.vlgmr.msra.gmra.mrb[0].mxu0 %v60_v11 }
 0x12d   :  { %v166_v16 = vpop.f32.mrb[0].mxu0 }
 0x12e   :  { %v167_v17 = vadd.f32 %v241_v15, %v166_v16  ;;  %v278_v18 = vpop.f32.mrb[1].mxu0 }
 0x12f   :  { %v169_v19 = vpop.f32.mrb[2].mxu0 }
 0x130   :  { %173 = vst [vmem:[#allocation8] sm:$0xff] %v167_v17  ;;  %v170_v21 = vadd.f32 %v241_v15, %v169_v19  ;;  %v279_v22 = vpop.f32.mrb[3].mxu0 }
 0x132   :  { %v189_v23 = vmul.f32 %v250_v20, %v170_v21  ;;  %174 = vst [vmem:[#allocation8 + $0x8] sm:$0xff] %v170_v21 }
 0x133   :  { %376 = shalt.err (!%p373_p0)
}
 0x134   :  { %s377_s6 = scalar_lea.hbm %s522_s3, 256 }
 0x135   :  { %p378_p1 = scmp.ne.s32.totalorder %s522_s3, %s377_s6  ;;  %p381_p2 = scmp.lt.u32.totalorder %s377_s6, %s522_s3 }
 0x137   :  { %p383_p3 = pnand %p381_p2, %p378_p1 }
 0x139   :  { %386 = shalt.err (!%p383_p3)
}
 0x13a   :  { %220 = dma.vmem_to_hbm [thread:$0]  %s215_s28, 256, %s522_s3, [#allocation4], %s421_s1, %s421_s1, %s422_s13   ;;  %v197_v24 = vmul.f32 %v167_v17, %v167_v17  ;;  %v190_v25 = vadd.f32 %v189_v23, %v167_v17  ;;  %v198_v26 = vmul.f32 %v189_v23, %v170_v21  ;;  %vm206_vm2 = vcmask 1040384  }
 0x13b   :  { %s427_s14 = smov [#allocation9]  }
 0x13c   :  { %v191_v27 = vrot.slane %v190_v25, 4  ;;  %v199_v28 = vadd.f32 %v198_v26, %v197_v24  ;;  %s227_s15 = sshll.u32 %s427_s14, 4  ;;  %s228_s15 = int_to_ptr.vmem [resolvable:$true] %s227_s15 }
 0x13d   :  { %s387_s3 = scalar_lea.vmem %s228_s15, 32  ;;  %p392_p5 = scmp.lt.s32.totalorder %s228_s15, %s228_s15 }
 0x13e   :  { %v192_v29 = vadd.f32 %v191_v27, %v190_v25  ;;  %v200_v30 = vrot.slane %v199_v28, 4  ;;  %p388_p4 = scmp.ne.s32.totalorder %s228_s15, %s387_s3  ;;  %p393_p6 = scmp.lt.s32.totalorder %s387_s3, %s387_s3 }
 0x140   :  { %v193_v31 = vrot.slane %v192_v29, 2  ;;  %v201_v32 = vadd.f32 %v200_v30, %v199_v28  ;;  %p394_p7 = por %p393_p6, %p392_p5 }
 0x142   :  { %v202_v33 = vrot.slane %v201_v32, 2  ;;  %v194_v34 = vadd.f32 %v193_v31, %v192_v29  ;;  %p395_p8 = pnand %p394_p7, %p388_p4 }
 0x144   :  { %v195_v35 = vrot.slane %v194_v34, 1  ;;  %v203_v36 = vadd.f32 %v202_v33, %v201_v32 }
 0x146   :  { %v204_v37 = vrot.slane %v203_v36, 1  ;;  %v196_v38 = vadd.f32 %v195_v35, %v194_v34 }
 0x148   :  { %v205_v39 = vadd.f32 %v204_v37, %v203_v36 }
 0x14a   :  { %v207_v40 = vsel %vm206_vm2, %v196_v38, %v205_v39 }
 0x14b   :  { %208 = vst [vmem:[#allocation9] sm:$0x3] %v207_v40 }
 0x14c   :  { %398 = shalt.err (!%p395_p8)
}
 0x14d   :  { %s399_s16 = scalar_lea.hbm %s523_s4, 32 }
 0x14e   :  { %p400_p9 = scmp.ne.s32.totalorder %s523_s4, %s399_s16  ;;  %p403_p10 = scmp.lt.u32.totalorder %s399_s16, %s523_s4 }
 0x150   :  { %p405_p11 = pnand %p403_p10, %p400_p9 }
 0x152   :  { %408 = shalt.err (!%p405_p11)
}
 0x153   :  { %230 = dma.vmem_to_hbm [thread:$0]  %s228_s15, 32, %s523_s4, [#allocation10]  }
 0x154   :  { %413 = dma.done.wait [#allocation4], 256  }
 0x155   :  { %414 = vsyncadd [#allocation4], 4294967040 }
 0x156   :  { %415 = dma.done.wait [#allocation10], 32  }
 0x157   :  { %416 = vsyncadd [#allocation10], 4294967264 }
 0x158   :  { %237 = vsyncpa [#allocation3], 1 }
 0x159   :  { %238 = vsyncpa [#allocation6], 1 }
 0x15a   :  { %239 = vsyncpa [#allocation4], 1 }
 0x15b   :  { %240 = vsyncpa [#allocation10], 1 }

</bundles_post_ra>
